<compile_context>
chip_gen: v7x
topology: tpu7x:2x2x1
jax: 0.10.0
libtpu: 0.0.40
codegen_flags: <defaults>
</compile_context>

<pallas_src>
import jax
import jax.numpy as jnp
import numpy as np
from jax import lax
from jax.experimental import pallas as pl
from jax.experimental.pallas import tpu as pltpu


def _make_kernel(num_head, key_dim, value_dim, key_scale, gating, compute_dtype):
    # exact reciprocal on the f32 path keeps the tight-tolerance check honest;
    # the approx EUP reciprocal is used on the low-precision (bf16) path.
    approx_recip = compute_dtype == jnp.bfloat16

    def kernel(q_ref, m_ref, bias_ref, qw_ref, kw_ref, vw_ref, *rest):
        if gating:
            gw_ref, gb_ref, ow_ref, ob_ref, out_ref, kp_s, vp_s, wa_s = rest
        else:
            ow_ref, ob_ref, out_ref, kp_s, vp_s, wa_s = rest

        # ---- per-batch K/V projection cache: compute once per batch --------
        # (query axis is the innermost "arbitrary" grid axis, so i==0 runs
        #  before every other query block of the same batch; scratch persists)
        @pl.when(pl.program_id(1) == 0)
        def _():
            m_data = m_ref[0]                                        # (K, Cm)
            kp_s[...] = jnp.dot(m_data, kw_ref[...],
                                preferred_element_type=jnp.float32
                                ).astype(compute_dtype)              # (K, H*Kd)
            vp_s[...] = jnp.dot(m_data, vw_ref[...],
                                preferred_element_type=jnp.float32
                                ).astype(compute_dtype)              # (K, H*Vd)

        q_data = q_ref[0]                                            # (TQ, Cq)
        bias = bias_ref[0].astype(jnp.float32)                       # (TQ,K) or (1,K)

        qp = (jnp.dot(q_data, qw_ref[...], preferred_element_type=jnp.float32)
              * key_scale).astype(compute_dtype)                     # (TQ, H*Kd)

        # ---- per-head attention; normalized wa written into fused buffer ---
        for h in range(num_head):
            ksl = slice(h * key_dim, (h + 1) * key_dim)
            vsl = slice(h * value_dim, (h + 1) * value_dim)
            qh = qp[:, ksl]                                          # (TQ, Kd)
            kh = kp_s[:, ksl]                                        # (K,  Kd)
            vh = vp_s[:, vsl]                                        # (K,  Vd)

            logits = lax.dot_general(
                qh, kh, (((1,), (1,)), ((), ())),
                preferred_element_type=jnp.float32) + bias           # (TQ, K)
            mx = jnp.max(logits, axis=-1, keepdims=True)
            e = jnp.exp(logits - mx)
            l = jnp.sum(e, axis=-1, keepdims=True)                   # (TQ, 1)

            wa = jnp.dot(e.astype(compute_dtype), vh,
                         preferred_element_type=jnp.float32)         # (TQ, Vd)
            r = pl.reciprocal(l, approx=approx_recip)
            wa_s[:, vsl] = (wa * r).astype(compute_dtype)

        wa_all = wa_s[...]                                           # (TQ, H*Vd)
        if gating:
            gate = jax.nn.sigmoid(
                jnp.dot(q_data, gw_ref[...], preferred_element_type=jnp.float32)
                + gb_ref[...])                                       # (TQ, H*Vd)
            wa_all = (wa_all.astype(jnp.float32) * gate).astype(compute_dtype)

        out = jnp.dot(wa_all, ow_ref[...],
                      preferred_element_type=jnp.float32)            # (TQ, O)
        out_ref[0] = out + ob_ref[...]

    return kernel


def attention_batch(q_data, m_data, bias, params, num_head,
                    nonbatched_bias=None, batched_bias=None, gating=True,
                    block_q=128, compute_dtype=jnp.float32,
                    vmem_limit_bytes=None):
    """q_data [B,Q,Cq], m_data [B,K,Cm], bias broadcastable to [B,Q,K]."""
    B, Q, Cq = q_data.shape
    _, K, Cm = m_data.shape
    H = num_head
    Kd = params["query_w"].shape[-1]
    Vd = params["value_w"].shape[-1]
    O = params["output_b"].shape[0]

    # Module quirk: batched_bias is applied only when nonbatched_bias is given.
    assert not (batched_bias is not None and nonbatched_bias is None), (
        "batched_bias is only applied when nonbatched_bias is provided "
        "(matching the original module)")

    # ---- bias: only densify to (B,Q,K) when a query-dependent bias exists ----
    bias = jnp.asarray(bias, jnp.float32)
    if nonbatched_bias is not None:
        bias_arr = (jnp.broadcast_to(bias, (B, Q, K))
                    + jnp.asarray(nonbatched_bias, jnp.float32)[None]
                    + jnp.broadcast_to(jnp.asarray(batched_bias, jnp.float32),
                                       (B, Q, K)))
        bias_per_query = True
    elif bias.ndim == 3 and bias.shape[1] == 1:
        bias_arr = bias                                   # (B, 1, K), broadcast in kernel
        bias_per_query = False
    else:
        bias_arr = jnp.broadcast_to(bias, (B, Q, K))
        bias_per_query = True

    # ---- query blocking: pad Q up to a multiple of the block (no tq=Q fallback)
    if Q <= block_q:
        tq, q_pad = Q, Q
    else:
        tq = max(8, (block_q // 8) * 8)
        q_pad = ((Q + tq - 1) // tq) * tq
    nq = q_pad // tq

    if q_pad != Q:
        pad = q_pad - Q
        q_data = jnp.pad(q_data, ((0, 0), (0, pad), (0, 0)))
        if bias_per_query:
            bias_arr = jnp.pad(bias_arr, ((0, 0), (0, pad), (0, 0)))

    # ---- head-fused, lane-dense weight stacks (cast to the MXU operand dtype)
    cdt = compute_dtype
    q_in = q_data.astype(cdt)
    m_in = m_data.astype(cdt)
    qw2 = jnp.asarray(params["query_w"]).reshape(Cq, H * Kd).astype(cdt)
    kw2 = jnp.asarray(params["key_w"]).reshape(Cm, H * Kd).astype(cdt)
    vw2 = jnp.asarray(params["value_w"]).reshape(Cm, H * Vd).astype(cdt)
    ow2 = jnp.asarray(params["output_w"]).reshape(H * Vd, O).astype(cdt)
    ob2 = jnp.asarray(params["output_b"], jnp.float32).reshape(1, O)

    def wspec(shape):
        # grid-invariant operand: resident in VMEM, single-buffered.
        return pl.BlockSpec(shape, lambda b, i: (0, 0),
                            pipeline_mode=pl.Buffered(1))

    args = [q_in, m_in, bias_arr, qw2, kw2, vw2]
    in_specs = [
        pl.BlockSpec((1, tq, Cq), lambda b, i: (b, i, 0)),           # q_data
        pl.BlockSpec((1, K, Cm), lambda b, i: (b, 0, 0)),            # m_data
        (pl.BlockSpec((1, tq, K), lambda b, i: (b, i, 0)) if bias_per_query
         else pl.BlockSpec((1, 1, K), lambda b, i: (b, 0, 0))),      # bias
        wspec((Cq, H * Kd)),                                         # query_w
        wspec((Cm, H * Kd)),                                         # key_w
        wspec((Cm, H * Vd)),                                         # value_w
    ]
    if gating:
        gw2 = jnp.asarray(params["gating_w"]).reshape(Cq, H * Vd).astype(cdt)
        gb2 = jnp.asarray(params["gating_b"], jnp.float32).reshape(1, H * Vd)
        args += [gw2, gb2]
        in_specs += [wspec((Cq, H * Vd)), wspec((1, H * Vd))]
    args += [ow2, ob2]
    in_specs += [wspec((H * Vd, O)), wspec((1, O))]

    kernel = _make_kernel(H, Kd, Vd, float(Kd) ** (-0.5), gating, cdt)

    out = pl.pallas_call(
        kernel,
        out_shape=jax.ShapeDtypeStruct((B, q_pad, O), jnp.float32),
        grid_spec=pltpu.PrefetchScalarGridSpec(
            num_scalar_prefetch=0,
            grid=(B, nq),
            in_specs=in_specs,
            out_specs=pl.BlockSpec((1, tq, O), lambda b, i: (b, i, 0)),
            scratch_shapes=[
                pltpu.VMEM((K, H * Kd), cdt),     # cached K projection
                pltpu.VMEM((K, H * Vd), cdt),     # cached V projection
                pltpu.VMEM((tq, H * Vd), cdt),    # fused per-head weighted avg
            ]),
        compiler_params=pltpu.CompilerParams(
            # batch stays "parallel" (v7x megacore); query axis must be
            # "arbitrary" because the K/V scratch cache carries state across it.
            dimension_semantics=("parallel", "arbitrary"),
            vmem_limit_bytes=vmem_limit_bytes),
    )(*args)

    return out[:, :Q] if q_pad != Q else out


def reference_np(q_data, m_data, bias, params, num_head,
                 nonbatched_bias=None, batched_bias=None, gating=True):
    """Pure numpy (float64) transcription of the module forward pass."""
    f = lambda a: np.asarray(a, np.float64)
    q_data, m_data, bias = f(q_data), f(m_data), f(bias)
    query_w, key_w, value_w = f(params["query_w"]), f(params["key_w"]), f(params["value_w"])
    output_w, output_b = f(params["output_w"]), f(params["output_b"])
    key_dim = query_w.shape[-1]

    q = np.einsum("bqa,ahc->bqhc", q_data, query_w) * key_dim ** (-0.5)
    k = np.einsum("bka,ahc->bkhc", m_data, key_w)
    v = np.einsum("bka,ahc->bkhc", m_data, value_w)
    logits = np.einsum("bqhc,bkhc->bhqk", q, k) + bias[:, None]
    if nonbatched_bias is not None:
        logits = logits + f(nonbatched_bias)[None, None]
        logits = logits + f(batched_bias)[:, None]
    logits = logits - logits.max(-1, keepdims=True)
    w = np.exp(logits)
    w = w / w.sum(-1, keepdims=True)
    wa = np.einsum("bhqk,bkhc->bqhc", w, v)
    if gating:
        gate = 1.0 / (1.0 + np.exp(-(np.einsum("bqc,chv->bqhv", q_data,
                                               f(params["gating_w"]))
                                     + f(params["gating_b"]))))
        wa = wa * gate
    return np.einsum("bqhc,hco->bqo", wa, output_w) + output_b


if __name__ == "__main__":
    # small shapes: batch=2, N_keys=16, channels=32, heads=4
    B, K, C, H = 2, 16, 32, 4
    Kd = Vd = C // H
    O = C

    key = jax.random.PRNGKey(0)
    ks = jax.random.split(key, 12)

    def xavier(k, shape, fan_in, fan_out):
        lim = float(np.sqrt(6.0 / (fan_in + fan_out)))
        return jax.random.uniform(k, shape, jnp.float32, -lim, lim)

    # Synthetic parameters with the module's shapes (gating_w/output_w would be
    # zero-init in the module; random values exercise the full math path).
    params = dict(
        query_w=xavier(ks[0], (C, H, Kd), C, H * Kd),
        key_w=xavier(ks[1], (C, H, Kd), C, H * Kd),
        value_w=xavier(ks[2], (C, H, Vd), C, H * Vd),
        gating_w=0.1 * jax.random.normal(ks[3], (C, H, Vd), jnp.float32),
        gating_b=jnp.ones((H, Vd), jnp.float32),
        output_w=xavier(ks[4], (H, Vd, O), Vd, O),
        output_b=0.05 * jax.random.normal(ks[5], (O,), jnp.float32),
    )

    # ---- run 1: f32 compute, dense folded bias, gating, padded multi-block Q
    Q1 = 24                                   # block_q=16 -> pad to 32, nq=2
    q1 = jax.random.normal(ks[6], (B, Q1, C), jnp.float32)
    m1 = jax.random.normal(ks[7], (B, K, C), jnp.float32)
    key_mask = (jax.random.uniform(ks[8], (B, K)) > 0.2).astype(jnp.float32)
    bias1 = jnp.broadcast_to((1e4 * (key_mask - 1.0))[:, None, :], (B, Q1, K))
    nb1 = 0.5 * jax.random.normal(ks[9], (Q1, K), jnp.float32)
    bb1 = 0.5 * jax.random.normal(ks[10], (B, Q1, K), jnp.float32)

    out1 = attention_batch(q1, m1, bias1, params, H,
                           nonbatched_bias=nb1, batched_bias=bb1,
                           gating=True, block_q=16,
                           compute_dtype=jnp.float32)
    out1 = jax.block_until_ready(out1)
    assert out1.shape == (B, Q1, O), out1.shape
    ref1 = reference_np(q1, m1, bias1, params, H,
                        nonbatched_bias=nb1, batched_bias=bb1, gating=True)
    err1 = float(np.max(np.abs(np.asarray(out1, np.float64) - ref1)))
    if not np.allclose(np.asarray(out1, np.float64), ref1, rtol=2e-3, atol=2e-3):
        raise AssertionError(f"f32 kernel mismatch, max abs err = {err1}")

    # ---- run 2: bf16 compute, broadcast (B,1,K) key-mask bias, no gating
    Q2 = 16                                   # block_q=8 -> nq=2, no padding
    q2 = jax.random.normal(ks[11], (B, Q2, C), jnp.float32)
    bias2 = (1e4 * (key_mask - 1.0))[:, None, :]          # (B, 1, K)

    out2 = attention_batch(q2, m1, bias2, params, H, gating=False,
                           block_q=8, compute_dtype=jnp.bfloat16)
    out2 = jax.block_until_ready(out2)
    assert out2.shape == (B, Q2, O), out2.shape
    ref2 = reference_np(q2, m1, bias2, params, H, gating=False)
    err2 = float(np.max(np.abs(np.asarray(out2, np.float64) - ref2)))
    # loose tolerance: bf16 MXU operands (structural correctness is validated
    # at tight tolerance by the f32 run above).
    if not np.allclose(np.asarray(out2, np.float64), ref2, rtol=1e-1, atol=1e-1):
        raise AssertionError(f"bf16 kernel mismatch, max abs err = {err2}")

    print("KERNEL_OK")
</pallas_src>

<mosaic_0001>
module attributes {stable_mosaic.version = 11 : i64} {
  func.func @kernel(%arg0: i32, %arg1: i32, %arg2: memref<1x16x32xf32, #tpu.memory_space<vmem>>, %arg3: memref<1x16x32xf32, #tpu.memory_space<vmem>>, %arg4: memref<1x16x16xf32, #tpu.memory_space<vmem>>, %arg5: memref<32x32xf32, #tpu.memory_space<vmem>>, %arg6: memref<32x32xf32, #tpu.memory_space<vmem>>, %arg7: memref<32x32xf32, #tpu.memory_space<vmem>>, %arg8: memref<32x32xf32, #tpu.memory_space<vmem>>, %arg9: memref<1x32xf32, #tpu.memory_space<vmem>>, %arg10: memref<32x32xf32, #tpu.memory_space<vmem>>, %arg11: memref<1x32xf32, #tpu.memory_space<vmem>>, %arg12: memref<1x16x32xf32, #tpu.memory_space<vmem>>, %arg13: memref<16x32xf32, #tpu.memory_space<vmem>>, %arg14: memref<16x32xf32, #tpu.memory_space<vmem>>, %arg15: memref<16x32xf32, #tpu.memory_space<vmem>>) attributes {dimension_semantics = [#tpu.dimension_semantics<parallel>, #tpu.dimension_semantics<arbitrary>], iteration_bounds = array<i64: 2, 2>, scalar_prefetch = 0 : i64, scratch_operands = 3 : i64, tpu.core_type = #tpu.core_type<tc>, window_params = [{transform_indices = @transform_0, window_bounds = array<i64: 1, 16, 32>}, {transform_indices = @transform_1, window_bounds = array<i64: 1, 16, 32>}, {transform_indices = @transform_2, window_bounds = array<i64: 1, 16, 16>}, {pipeline_mode = #tpu.pipeline_mode<synchronous>, transform_indices = @transform_3, window_bounds = array<i64: 32, 32>}, {pipeline_mode = #tpu.pipeline_mode<synchronous>, transform_indices = @transform_4, window_bounds = array<i64: 32, 32>}, {pipeline_mode = #tpu.pipeline_mode<synchronous>, transform_indices = @transform_5, window_bounds = array<i64: 32, 32>}, {pipeline_mode = #tpu.pipeline_mode<synchronous>, transform_indices = @transform_6, window_bounds = array<i64: 32, 32>}, {pipeline_mode = #tpu.pipeline_mode<synchronous>, transform_indices = @transform_7, window_bounds = array<i64: 1, 32>}, {pipeline_mode = #tpu.pipeline_mode<synchronous>, transform_indices = @transform_8, window_bounds = array<i64: 32, 32>}, {pipeline_mode = #tpu.pipeline_mode<synchronous>, transform_indices = @transform_9, window_bounds = array<i64: 1, 32>}, {transform_indices = @transform_10, window_bounds = array<i64: 1, 16, 32>}]} {
    %c0_i32 = arith.constant 0 : i32
    %0 = arith.cmpi eq, %arg1, %c0_i32 : i32
    %1 = arith.extui %0 : i1 to i32
    %c0_i32_0 = arith.constant 0 : i32
    %2 = arith.cmpi ne, %1, %c0_i32_0 : i32
    scf.if %2 {
      %c0_62 = arith.constant 0 : index
      %c0_63 = arith.constant 0 : index
      %c0_64 = arith.constant 0 : index
      %99 = vector.load %arg3[%c0_62, %c0_63, %c0_64] : memref<1x16x32xf32, #tpu.memory_space<vmem>>, vector<1x16x32xf32>
      %100 = vector.shape_cast %99 : vector<1x16x32xf32> to vector<16x32xf32>
      %c0_65 = arith.constant 0 : index
      %c0_66 = arith.constant 0 : index
      %101 = vector.load %arg6[%c0_65, %c0_66] : memref<32x32xf32, #tpu.memory_space<vmem>>, vector<32x32xf32>
      %cst_67 = arith.constant dense<0.000000e+00> : vector<16x32xf32>
      %102 = tpu.matmul %100, %101, %cst_67 {dimension_numbers = #tpu.dot_dimension_numbers<[1], [0], [0], [1], [0, 0, 1, 1], [], []>} : vector<16x32xf32>, vector<32x32xf32>, vector<16x32xf32> -> vector<16x32xf32>
      %c0_68 = arith.constant 0 : index
      %c0_69 = arith.constant 0 : index
      %103 = vector.load %arg13[%c0_68, %c0_69] : memref<16x32xf32, #tpu.memory_space<vmem>>, vector<16x32xf32>
      tpu.vector_store %arg13[%c0_68, %c0_69], %102 {strides = array<i32>} : memref<16x32xf32, #tpu.memory_space<vmem>>, vector<16x32xf32>,
      %c0_70 = arith.constant 0 : index
      %c0_71 = arith.constant 0 : index
      %104 = vector.load %arg7[%c0_70, %c0_71] : memref<32x32xf32, #tpu.memory_space<vmem>>, vector<32x32xf32>
      %cst_72 = arith.constant dense<0.000000e+00> : vector<16x32xf32>
      %105 = tpu.matmul %100, %104, %cst_72 {dimension_numbers = #tpu.dot_dimension_numbers<[1], [0], [0], [1], [0, 0, 1, 1], [], []>} : vector<16x32xf32>, vector<32x32xf32>, vector<16x32xf32> -> vector<16x32xf32>
      %c0_73 = arith.constant 0 : index
      %c0_74 = arith.constant 0 : index
      %106 = vector.load %arg14[%c0_73, %c0_74] : memref<16x32xf32, #tpu.memory_space<vmem>>, vector<16x32xf32>
      tpu.vector_store %arg14[%c0_73, %c0_74], %105 {strides = array<i32>} : memref<16x32xf32, #tpu.memory_space<vmem>>, vector<16x32xf32>,
    } else {
    }
    %c0 = arith.constant 0 : index
    %c0_1 = arith.constant 0 : index
    %c0_2 = arith.constant 0 : index
    %3 = vector.load %arg2[%c0, %c0_1, %c0_2] : memref<1x16x32xf32, #tpu.memory_space<vmem>>, vector<1x16x32xf32>
    %4 = vector.shape_cast %3 : vector<1x16x32xf32> to vector<16x32xf32>
    %c0_3 = arith.constant 0 : index
    %c0_4 = arith.constant 0 : index
    %c0_5 = arith.constant 0 : index
    %5 = vector.load %arg4[%c0_3, %c0_4, %c0_5] : memref<1x16x16xf32, #tpu.memory_space<vmem>>, vector<1x16x16xf32>
    %6 = vector.shape_cast %5 : vector<1x16x16xf32> to vector<16x16xf32>
    %c0_6 = arith.constant 0 : index
    %c0_7 = arith.constant 0 : index
    %7 = vector.load %arg5[%c0_6, %c0_7] : memref<32x32xf32, #tpu.memory_space<vmem>>, vector<32x32xf32>
    %cst = arith.constant dense<0.000000e+00> : vector<16x32xf32>
    %8 = tpu.matmul %4, %7, %cst {dimension_numbers = #tpu.dot_dimension_numbers<[1], [0], [0], [1], [0, 0, 1, 1], [], []>} : vector<16x32xf32>, vector<32x32xf32>, vector<16x32xf32> -> vector<16x32xf32>
    %cst_8 = arith.constant 0.353553385 : f32
    %9 = vector.broadcast %cst_8 : f32 to vector<16x32xf32>
    %10 = arith.mulf %8, %9 : vector<16x32xf32>
    %11 = vector.extract_strided_slice %10 {offsets = [0, 0], sizes = [16, 8], strides = [1, 1]} : vector<16x32xf32> to vector<16x8xf32>
    %c0_9 = arith.constant 0 : index
    %c0_10 = arith.constant 0 : index
    %12 = vector.load %arg13[%c0_9, %c0_10] : memref<16x32xf32, #tpu.memory_space<vmem>>, vector<16x8xf32>
    %c0_11 = arith.constant 0 : index
    %c0_12 = arith.constant 0 : index
    %13 = vector.load %arg14[%c0_11, %c0_12] : memref<16x32xf32, #tpu.memory_space<vmem>>, vector<16x8xf32>
    %cst_13 = arith.constant dense<0.000000e+00> : vector<16x16xf32>
    %14 = tpu.matmul %11, %12, %cst_13 {dimension_numbers = #tpu.dot_dimension_numbers<[1], [1], [0], [0], [0, 0, 1, 0], [], []>} : vector<16x8xf32>, vector<16x8xf32>, vector<16x16xf32> -> vector<16x16xf32>
    %15 = arith.addf %14, %6 : vector<16x16xf32>
    %cst_14 = arith.constant dense<0xFF800000> : vector<16xf32>
    %16 = vector.multi_reduction <maximumf>, %15, %cst_14 [1] : vector<16x16xf32> to vector<16xf32>
    %17 = vector.shape_cast %16 : vector<16xf32> to vector<16x1xf32>
    %18 = vector.broadcast %17 : vector<16x1xf32> to vector<16x16xf32>
    %19 = arith.subf %15, %18 : vector<16x16xf32>
    %20 = math.exp %19 : vector<16x16xf32>
    %cst_15 = arith.constant dense<0.000000e+00> : vector<16xf32>
    %21 = vector.multi_reduction <add>, %20, %cst_15 [1] : vector<16x16xf32> to vector<16xf32>
    %22 = vector.shape_cast %21 : vector<16xf32> to vector<16x1xf32>
    %cst_16 = arith.constant dense<0.000000e+00> : vector<16x8xf32>
    %23 = tpu.matmul %20, %13, %cst_16 {dimension_numbers = #tpu.dot_dimension_numbers<[1], [0], [0], [1], [0, 0, 1, 1], [], []>} : vector<16x16xf32>, vector<16x8xf32>, vector<16x8xf32> -> vector<16x8xf32>
    %24 = tpu.reciprocal %22 : vector<16x1xf32> -> vector<16x1xf32>
    %25 = vector.broadcast %24 : vector<16x1xf32> to vector<16x8xf32>
    %26 = arith.mulf %23, %25 : vector<16x8xf32>
    %c0_17 = arith.constant 0 : index
    %c0_18 = arith.constant 0 : index
    %27 = vector.load %arg15[%c0_17, %c0_18] : memref<16x32xf32, #tpu.memory_space<vmem>>, vector<16x8xf32>
    tpu.vector_store %arg15[%c0_17, %c0_18], %26 {strides = array<i32>} : memref<16x32xf32, #tpu.memory_space<vmem>>, vector<16x8xf32>,
    %28 = vector.extract_strided_slice %10 {offsets = [0, 8], sizes = [16, 8], strides = [1, 1]} : vector<16x32xf32> to vector<16x8xf32>
    %c0_19 = arith.constant 0 : index
    %c8 = arith.constant 8 : index
    %29 = vector.load %arg13[%c0_19, %c8] : memref<16x32xf32, #tpu.memory_space<vmem>>, vector<16x8xf32>
    %c0_20 = arith.constant 0 : index
    %c8_21 = arith.constant 8 : index
    %30 = vector.load %arg14[%c0_20, %c8_21] : memref<16x32xf32, #tpu.memory_space<vmem>>, vector<16x8xf32>
    %cst_22 = arith.constant dense<0.000000e+00> : vector<16x16xf32>
    %31 = tpu.matmul %28, %29, %cst_22 {dimension_numbers = #tpu.dot_dimension_numbers<[1], [1], [0], [0], [0, 0, 1, 0], [], []>} : vector<16x8xf32>, vector<16x8xf32>, vector<16x16xf32> -> vector<16x16xf32>
    %32 = arith.addf %31, %6 : vector<16x16xf32>
    %cst_23 = arith.constant dense<0xFF800000> : vector<16xf32>
    %33 = vector.multi_reduction <maximumf>, %32, %cst_23 [1] : vector<16x16xf32> to vector<16xf32>
    %34 = vector.shape_cast %33 : vector<16xf32> to vector<16x1xf32>
    %35 = vector.broadcast %34 : vector<16x1xf32> to vector<16x16xf32>
    %36 = arith.subf %32, %35 : vector<16x16xf32>
    %37 = math.exp %36 : vector<16x16xf32>
    %cst_24 = arith.constant dense<0.000000e+00> : vector<16xf32>
    %38 = vector.multi_reduction <add>, %37, %cst_24 [1] : vector<16x16xf32> to vector<16xf32>
    %39 = vector.shape_cast %38 : vector<16xf32> to vector<16x1xf32>
    %cst_25 = arith.constant dense<0.000000e+00> : vector<16x8xf32>
    %40 = tpu.matmul %37, %30, %cst_25 {dimension_numbers = #tpu.dot_dimension_numbers<[1], [0], [0], [1], [0, 0, 1, 1], [], []>} : vector<16x16xf32>, vector<16x8xf32>, vector<16x8xf32> -> vector<16x8xf32>
    %41 = tpu.reciprocal %39 : vector<16x1xf32> -> vector<16x1xf32>
    %42 = vector.broadcast %41 : vector<16x1xf32> to vector<16x8xf32>
    %43 = arith.mulf %40, %42 : vector<16x8xf32>
    %c0_26 = arith.constant 0 : index
    %c8_27 = arith.constant 8 : index
    %44 = vector.load %arg15[%c0_26, %c8_27] : memref<16x32xf32, #tpu.memory_space<vmem>>, vector<16x8xf32>
    tpu.vector_store %arg15[%c0_26, %c8_27], %43 {strides = array<i32>} : memref<16x32xf32, #tpu.memory_space<vmem>>, vector<16x8xf32>,
    %45 = vector.extract_strided_slice %10 {offsets = [0, 16], sizes = [16, 8], strides = [1, 1]} : vector<16x32xf32> to vector<16x8xf32>
    %c0_28 = arith.constant 0 : index
    %c16 = arith.constant 16 : index
    %46 = vector.load %arg13[%c0_28, %c16] : memref<16x32xf32, #tpu.memory_space<vmem>>, vector<16x8xf32>
    %c0_29 = arith.constant 0 : index
    %c16_30 = arith.constant 16 : index
    %47 = vector.load %arg14[%c0_29, %c16_30] : memref<16x32xf32, #tpu.memory_space<vmem>>, vector<16x8xf32>
    %cst_31 = arith.constant dense<0.000000e+00> : vector<16x16xf32>
    %48 = tpu.matmul %45, %46, %cst_31 {dimension_numbers = #tpu.dot_dimension_numbers<[1], [1], [0], [0], [0, 0, 1, 0], [], []>} : vector<16x8xf32>, vector<16x8xf32>, vector<16x16xf32> -> vector<16x16xf32>
    %49 = arith.addf %48, %6 : vector<16x16xf32>
    %cst_32 = arith.constant dense<0xFF800000> : vector<16xf32>
    %50 = vector.multi_reduction <maximumf>, %49, %cst_32 [1] : vector<16x16xf32> to vector<16xf32>
    %51 = vector.shape_cast %50 : vector<16xf32> to vector<16x1xf32>
    %52 = vector.broadcast %51 : vector<16x1xf32> to vector<16x16xf32>
    %53 = arith.subf %49, %52 : vector<16x16xf32>
    %54 = math.exp %53 : vector<16x16xf32>
    %cst_33 = arith.constant dense<0.000000e+00> : vector<16xf32>
    %55 = vector.multi_reduction <add>, %54, %cst_33 [1] : vector<16x16xf32> to vector<16xf32>
    %56 = vector.shape_cast %55 : vector<16xf32> to vector<16x1xf32>
    %cst_34 = arith.constant dense<0.000000e+00> : vector<16x8xf32>
    %57 = tpu.matmul %54, %47, %cst_34 {dimension_numbers = #tpu.dot_dimension_numbers<[1], [0], [0], [1], [0, 0, 1, 1], [], []>} : vector<16x16xf32>, vector<16x8xf32>, vector<16x8xf32> -> vector<16x8xf32>
    %58 = tpu.reciprocal %56 : vector<16x1xf32> -> vector<16x1xf32>
    %59 = vector.broadcast %58 : vector<16x1xf32> to vector<16x8xf32>
    %60 = arith.mulf %57, %59 : vector<16x8xf32>
    %c0_35 = arith.constant 0 : index
    %c16_36 = arith.constant 16 : index
    %61 = vector.load %arg15[%c0_35, %c16_36] : memref<16x32xf32, #tpu.memory_space<vmem>>, vector<16x8xf32>
    tpu.vector_store %arg15[%c0_35, %c16_36], %60 {strides = array<i32>} : memref<16x32xf32, #tpu.memory_space<vmem>>, vector<16x8xf32>,
    %62 = vector.extract_strided_slice %10 {offsets = [0, 24], sizes = [16, 8], strides = [1, 1]} : vector<16x32xf32> to vector<16x8xf32>
    %c0_37 = arith.constant 0 : index
    %c24 = arith.constant 24 : index
    %63 = vector.load %arg13[%c0_37, %c24] : memref<16x32xf32, #tpu.memory_space<vmem>>, vector<16x8xf32>
    %c0_38 = arith.constant 0 : index
    %c24_39 = arith.constant 24 : index
    %64 = vector.load %arg14[%c0_38, %c24_39] : memref<16x32xf32, #tpu.memory_space<vmem>>, vector<16x8xf32>
    %cst_40 = arith.constant dense<0.000000e+00> : vector<16x16xf32>
    %65 = tpu.matmul %62, %63, %cst_40 {dimension_numbers = #tpu.dot_dimension_numbers<[1], [1], [0], [0], [0, 0, 1, 0], [], []>} : vector<16x8xf32>, vector<16x8xf32>, vector<16x16xf32> -> vector<16x16xf32>
    %66 = arith.addf %65, %6 : vector<16x16xf32>
    %cst_41 = arith.constant dense<0xFF800000> : vector<16xf32>
    %67 = vector.multi_reduction <maximumf>, %66, %cst_41 [1] : vector<16x16xf32> to vector<16xf32>
    %68 = vector.shape_cast %67 : vector<16xf32> to vector<16x1xf32>
    %69 = vector.broadcast %68 : vector<16x1xf32> to vector<16x16xf32>
    %70 = arith.subf %66, %69 : vector<16x16xf32>
    %71 = math.exp %70 : vector<16x16xf32>
    %cst_42 = arith.constant dense<0.000000e+00> : vector<16xf32>
    %72 = vector.multi_reduction <add>, %71, %cst_42 [1] : vector<16x16xf32> to vector<16xf32>
    %73 = vector.shape_cast %72 : vector<16xf32> to vector<16x1xf32>
    %cst_43 = arith.constant dense<0.000000e+00> : vector<16x8xf32>
    %74 = tpu.matmul %71, %64, %cst_43 {dimension_numbers = #tpu.dot_dimension_numbers<[1], [0], [0], [1], [0, 0, 1, 1], [], []>} : vector<16x16xf32>, vector<16x8xf32>, vector<16x8xf32> -> vector<16x8xf32>
    %75 = tpu.reciprocal %73 : vector<16x1xf32> -> vector<16x1xf32>
    %76 = vector.broadcast %75 : vector<16x1xf32> to vector<16x8xf32>
    %77 = arith.mulf %74, %76 : vector<16x8xf32>
    %c0_44 = arith.constant 0 : index
    %c24_45 = arith.constant 24 : index
    %78 = vector.load %arg15[%c0_44, %c24_45] : memref<16x32xf32, #tpu.memory_space<vmem>>, vector<16x8xf32>
    tpu.vector_store %arg15[%c0_44, %c24_45], %77 {strides = array<i32>} : memref<16x32xf32, #tpu.memory_space<vmem>>, vector<16x8xf32>,
    %c0_46 = arith.constant 0 : index
    %c0_47 = arith.constant 0 : index
    %79 = vector.load %arg15[%c0_46, %c0_47] : memref<16x32xf32, #tpu.memory_space<vmem>>, vector<16x32xf32>
    %c0_48 = arith.constant 0 : index
    %c0_49 = arith.constant 0 : index
    %80 = vector.load %arg8[%c0_48, %c0_49] : memref<32x32xf32, #tpu.memory_space<vmem>>, vector<32x32xf32>
    %cst_50 = arith.constant dense<0.000000e+00> : vector<16x32xf32>
    %81 = tpu.matmul %4, %80, %cst_50 {dimension_numbers = #tpu.dot_dimension_numbers<[1], [0], [0], [1], [0, 0, 1, 1], [], []>} : vector<16x32xf32>, vector<32x32xf32>, vector<16x32xf32> -> vector<16x32xf32>
    %c0_51 = arith.constant 0 : index
    %c0_52 = arith.constant 0 : index
    %82 = vector.load %arg9[%c0_51, %c0_52] : memref<1x32xf32, #tpu.memory_space<vmem>>, vector<1x32xf32>
    %83 = vector.broadcast %82 : vector<1x32xf32> to vector<16x32xf32>
    %84 = arith.addf %81, %83 : vector<16x32xf32>
    %85 = arith.negf %84 : vector<16x32xf32>
    %86 = math.exp %85 : vector<16x32xf32>
    %cst_53 = arith.constant 1.000000e+00 : f32
    %87 = vector.broadcast %cst_53 : f32 to vector<16x32xf32>
    %88 = arith.addf %87, %86 : vector<16x32xf32>
    %89 = arith.divf %87, %88 : vector<16x32xf32>
    %90 = arith.mulf %79, %89 : vector<16x32xf32>
    %c0_54 = arith.constant 0 : index
    %c0_55 = arith.constant 0 : index
    %91 = vector.load %arg10[%c0_54, %c0_55] : memref<32x32xf32, #tpu.memory_space<vmem>>, vector<32x32xf32>
    %cst_56 = arith.constant dense<0.000000e+00> : vector<16x32xf32>
    %92 = tpu.matmul %90, %91, %cst_56 {dimension_numbers = #tpu.dot_dimension_numbers<[1], [0], [0], [1], [0, 0, 1, 1], [], []>} : vector<16x32xf32>, vector<32x32xf32>, vector<16x32xf32> -> vector<16x32xf32>
    %c0_57 = arith.constant 0 : index
    %c0_58 = arith.constant 0 : index
    %93 = vector.load %arg11[%c0_57, %c0_58] : memref<1x32xf32, #tpu.memory_space<vmem>>, vector<1x32xf32>
    %94 = vector.broadcast %93 : vector<1x32xf32> to vector<16x32xf32>
    %95 = arith.addf %92, %94 : vector<16x32xf32>
    %c0_59 = arith.constant 0 : index
    %c0_60 = arith.constant 0 : index
    %c0_61 = arith.constant 0 : index
    %96 = vector.load %arg12[%c0_59, %c0_60, %c0_61] : memref<1x16x32xf32, #tpu.memory_space<vmem>>, vector<1x16x32xf32>
    %97 = vector.shape_cast %96 : vector<1x16x32xf32> to vector<16x32xf32>
    %98 = vector.shape_cast %95 : vector<16x32xf32> to vector<1x16x32xf32>
    tpu.vector_store %arg12[%c0_59, %c0_60, %c0_61], %98 {strides = array<i32>} : memref<1x16x32xf32, #tpu.memory_space<vmem>>, vector<1x16x32xf32>,
    return
  }
  func.func @transform_0(%arg0: i32, %arg1: i32) -> (i32, i32, i32) {
    %c0_i32 = arith.constant 0 : i32
    %c0_i32_0 = arith.constant 0 : i32
    return %arg0, %arg1, %c0_i32 : i32, i32, i32
  }
  func.func @transform_1(%arg0: i32, %arg1: i32) -> (i32, i32, i32) {
    %c0_i32 = arith.constant 0 : i32
    %c0_i32_0 = arith.constant 0 : i32
    %c0_i32_1 = arith.constant 0 : i32
    return %arg0, %c0_i32, %c0_i32_0 : i32, i32, i32
  }
  func.func @transform_2(%arg0: i32, %arg1: i32) -> (i32, i32, i32) {
    %c0_i32 = arith.constant 0 : i32
    %c0_i32_0 = arith.constant 0 : i32
    return %arg0, %arg1, %c0_i32 : i32, i32, i32
  }
  func.func @transform_3(%arg0: i32, %arg1: i32) -> (i32, i32) {
    %c0_i32 = arith.constant 0 : i32
    %c0_i32_0 = arith.constant 0 : i32
    %c0_i32_1 = arith.constant 0 : i32
    return %c0_i32, %c0_i32_0 : i32, i32
  }
  func.func @transform_4(%arg0: i32, %arg1: i32) -> (i32, i32) {
    %c0_i32 = arith.constant 0 : i32
    %c0_i32_0 = arith.constant 0 : i32
    %c0_i32_1 = arith.constant 0 : i32
    return %c0_i32, %c0_i32_0 : i32, i32
  }
  func.func @transform_5(%arg0: i32, %arg1: i32) -> (i32, i32) {
    %c0_i32 = arith.constant 0 : i32
    %c0_i32_0 = arith.constant 0 : i32
    %c0_i32_1 = arith.constant 0 : i32
    return %c0_i32, %c0_i32_0 : i32, i32
  }
  func.func @transform_6(%arg0: i32, %arg1: i32) -> (i32, i32) {
    %c0_i32 = arith.constant 0 : i32
    %c0_i32_0 = arith.constant 0 : i32
    %c0_i32_1 = arith.constant 0 : i32
    return %c0_i32, %c0_i32_0 : i32, i32
  }
  func.func @transform_7(%arg0: i32, %arg1: i32) -> (i32, i32) {
    %c0_i32 = arith.constant 0 : i32
    %c0_i32_0 = arith.constant 0 : i32
    %c0_i32_1 = arith.constant 0 : i32
    return %c0_i32, %c0_i32_0 : i32, i32
  }
  func.func @transform_8(%arg0: i32, %arg1: i32) -> (i32, i32) {
    %c0_i32 = arith.constant 0 : i32
    %c0_i32_0 = arith.constant 0 : i32
    %c0_i32_1 = arith.constant 0 : i32
    return %c0_i32, %c0_i32_0 : i32, i32
  }
  func.func @transform_9(%arg0: i32, %arg1: i32) -> (i32, i32) {
    %c0_i32 = arith.constant 0 : i32
    %c0_i32_0 = arith.constant 0 : i32
    %c0_i32_1 = arith.constant 0 : i32
    return %c0_i32, %c0_i32_0 : i32, i32
  }
  func.func @transform_10(%arg0: i32, %arg1: i32) -> (i32, i32, i32) {
    %c0_i32 = arith.constant 0 : i32
    %c0_i32_0 = arith.constant 0 : i32
    return %arg0, %arg1, %c0_i32 : i32, i32, i32
  }
}

</mosaic_0001>

<bundles_post_ra>
// kernel: tpu_custom_call.1
= control target key start
LH: loop header
LB: loop body
LE: loop exit
PB: predicated region body
PF: predicated region fallthrough
CT: control target
= control target key end

     0   :  { %s3329_s0 = inlined_call_operand.vmem [shape: f32[2,32,32], index: 0, kind: input, shape index: {}]   ;;  %s3330_s1 = inlined_call_operand.vmem [shape: f32[2,16,32], index: 1, kind: input, shape index: {}]   ;;  %s3331_s2 = inlined_call_operand.vmem [shape: f32[2,32,16], index: 2, kind: input, shape index: {}]   ;;  %s3332_s3 = inlined_call_operand.hbm [shape: f32[32,32], index: 3, kind: input, shape index: {}]   ;;  %s3333_s4 = inlined_call_operand.hbm [shape: f32[32,32], index: 4, kind: input, shape index: {}]   ;;  %s3334_s5 = inlined_call_operand.hbm [shape: f32[32,32], index: 5, kind: input, shape index: {}]   ;;  %s3335_s6 = inlined_call_operand.hbm [shape: f32[32,32], index: 6, kind: input, shape index: {}]   ;;  %s3336_s7 = inlined_call_operand.vmem [shape: f32[1,32], index: 7, kind: input, shape index: {}]   ;;  %s3337_s8 = inlined_call_operand.hbm [shape: f32[32,32], index: 8, kind: input, shape index: {}]   ;;  %s3338_s9 = inlined_call_operand.vmem [shape: f32[1,32], index: 9, kind: input, shape index: {}]   ;;  %s3339_s10 = inlined_call_operand.hbm [shape: f32[2,32,32], index: 10, kind: output, shape index: {}]  }
   0x1   :  { %3354 = sst [smem:[#allocation28_spill]] %s3333_s4 }
   0x2   :  { %3355 = sst [smem:[#allocation29_spill]] %s3338_s9 }
   0x3   :  { %3356 = sst [smem:[#allocation30_spill]] %s3339_s10 }
   0x4   :  { %15 = vsyncpa [#allocation6], 0 }
   0x5   :  { %16 = vsyncpa [#allocation9], 0 }
   0x6   :  { %17 = vsyncpa [#allocation12], 0 }
   0x7   :  { %18 = vsyncpa [#allocation7], 0 }
   0x8   :  { %20 = vsyncpa [#allocation7 + $0x1], 0  ;;  %s2856_s13 = smov 0   ;;  %s2858_s14 = smov 0  }
   0x9   :  { %s2860_s15 = smov 0   ;;  %s2862_s16 = smov 0  }
   0xa   :  { %s2864_s17 = smov 0   ;;  %s2866_s18 = smov 0  }
   0xb   :  { %s2868_s19 = smov 0   ;;  %s2870_s20 = smov 0  }
   0xc LB: > { %3357 = sst [smem:[#allocation19_spill]] %s2756_s13  ;;  %s2014_s21 = sadd.s32 4294967295, %s2784_s20   ;;  %s2784_s20 = sphi %s2870_s20, %s26_s20   ;;  %s2780_s19 = sphi %s2868_s19, %s3390_s19   ;;  %s2776_s18 = sphi %s2866_s18, %s3389_s18   ;;  %s2772_s17 = sphi %s2864_s17, %s3388_s17   ;;  %s2768_s16 = sphi %s2862_s16, %s3387_s16   ;;  %s2764_s15 = sphi %s2860_s15, %s3386_s15   ;;  %s2760_s14 = sphi %s2858_s14, %s3392_s14   ;;  %s2756_s13 = sphi %s2856_s13, %s3391_s13  }
   0xd   : > { %3358 = sst [smem:[#allocation20_spill]] %s2764_s15  ;;  %s2015_s22 = sadd.s32 4294967294, %s2784_s20  }
   0xe   : > { %3359 = sst [smem:[#allocation21_spill]] %s2776_s18  ;;  %s35_s23 = sadd.s32 1, %s2776_s18 }
   0xf   : > { %3360 = sst [smem:[#allocation22_spill]] %s2780_s19  ;;  %s38_s24 = sadd.s32 1, %s2780_s19 }
  0x10   : > { %3361 = sst [smem:[#allocation23_spill]] %s2784_s20  ;;  %p36_p0 = scmp.ge.s32.totalorder %s35_s23, 2 }
  0x11   : > { %s276_s25 = sadd.s32 1, %s2764_s15  ;;  %p286_p1 = scmp.ne.s32.totalorder %s2764_s15, %s2760_s14 }
  0x12   : > { %p287_p2 = scmp.eq.s32.totalorder %s2014_s21, 3  ;;  %s3394_s23 = smov (%p36_p0, %s35_s23), 0 }
  0x13   : > { %3362 = sst [smem:[#allocation24_spill]] %s3394_s23  ;;  %s3396_s24 = smov (!%p36_p0, %s38_s24), %s2780_s19 }
  0x14   : > { %s272_s26 = ssub.s32 %s2776_s18, %s3394_s23  ;;  %p2908_p3 = por %p287_p2, %p286_p1 }
  0x15   : > { %p40_p4 = scmp.ge.s32.totalorder %s3396_s24, 2  ;;  %p292_p5 = scmp.ne.s32.totalorder %s2760_s14, %s2756_s13 }
  0x16   : > { %s3363_s27 = scalar_select %p2908_p3, 1, 0 }
  0x17   : > { %p293_p6 = scmp.eq.s32.totalorder %s2015_s22, 3  ;;  %p2016_p7 = scmp.ge.s32.totalorder %s2784_s20, 1 }
  0x18   : > { %s3398_s24 = smov (%p40_p4, %s3396_s24), 0  ;;  %p300_p9 = scmp.lt.s32.totalorder %s2784_s20, 5 }
  0x19   : > { %3364 = sst [smem:[#allocation25_spill]] %s3398_s24  ;;  %p2917_p8 = por %p293_p6, %p292_p5 }
  0x1a   : > { %s271_s29 = ssub.s32 %s2780_s19, %s3398_s24  ;;  %p2924_p10 = pnand %p2016_p7, %p300_p9 }
  0x1b   : > { %s3365_s28 = scalar_select %p2917_p8, 1, 0 }
  0x1c   : > { %s273_s30 = sor.u32 %s272_s26, %s271_s29  ;;  %p2928_p12 = scmp.eq.s32.totalorder %s2014_s21, 0 }
  0x1d   : > { %3366 = sst [smem:[#allocation26_spill]] %s3365_s28  ;;  %p274_p11 = scmp.eq.s32.totalorder %s273_s30, 0 }
  0x1e   : > { %s3367_s11 = scalar_select %p2924_p10, 1, 0 }
  0x1f   : > { %s3368_s12 = scalar_select %p2928_p12, 1, 0 }
  0x20   : > { %p2359_p13 = pneg %p2924_p10  ;;  %s2786_s26 = smov [#allocation8]  }
  0x21   : > { %s2935_s22 = scalar_select %p274_p11, %s2764_s15, %s276_s25  }
  0x22   : > { %p2939_p0 = pnand %p2928_p12, %p2359_p13  ;;  %s325_s29 = sshll.u32 %s2786_s26, 4  ;;  %s326_s29 = int_to_ptr.vmem [resolvable:$true] %s325_s29 }
  0x23   : > { %3369 = sst [smem:[#allocation27_spill]] %s2935_s22  ;;  %s2787_s24 = smov [#allocation11]  }
  0x24   : > { %s351_s30 = sshll.u32 %s2787_s24, 4  ;;  %s3371_s4 = sld [smem:[#allocation28_spill]]  ;;  %s352_s30 = int_to_ptr.vmem [resolvable:$true] %s351_s30 }
  0x25   : > { %p2951_p2 = pneg %p2939_p0 }
  0x2a   : > { %s2538_s18 = scalar_lea.hbm %s3371_s4, 512 }
  0x2b   : > { %p2539_p1 = scmp.ne.s32.totalorder %s3371_s4, %s2538_s18  ;;  %p2545_p6 = scmp.lt.u32.totalorder %s2538_s18, %s3371_s4 }
  0x2d   : > { %p2541_p4 = pnand %p2951_p2, %p2539_p1 }
  0x2f   : > { %p2542_p5 = pneg %p2541_p4 }
  0x31   : > { %p2547_p7 = pnand %p2545_p6, %p2542_p5 }
  0x33   : > { %2550 = shalt.err (!%p2547_p7)
}
  0x34   : > { %s2551_s19 = scalar_lea.vmem %s326_s29, 512  ;;  %p2559_p8 = scmp.lt.s32.totalorder %s326_s29, %s326_s29 }
  0x35   : > { %p2552_p9 = scmp.ne.s32.totalorder %s326_s29, %s2551_s19  ;;  %p2560_p3 = scmp.lt.s32.totalorder %s2551_s19, %s2551_s19 }
  0x37   : > { %p2554_p11 = pnand %p2552_p9, %p2951_p2  ;;  %p2561_p12 = por %p2560_p3, %p2559_p8 }
  0x39   : > { %p2555_p13 = pneg %p2554_p11 }
  0x3b   : > { %p2562_p10 = pnand %p2561_p12, %p2555_p13 }
  0x3d   : > { %2565 = shalt.err (!%p2562_p10)
}
  0x3e   : > { %s2788_s13 = smov 128   ;;  %s2789_s24 = smov 8  }
  0x3f   : > { %2365 = dma.hbm_to_vmem [thread:$0]  (!%p2939_p0), %s3371_s4, 512, %s326_s29, [#allocation9], %s2788_s13, %s2788_s13, %s2789_s24  }
  0x40   : > { %s2566_s26 = scalar_lea.hbm %s3335_s6, 512 }
  0x41   : > { %p2567_p3 = scmp.ne.s32.totalorder %s3335_s6, %s2566_s26  ;;  %p2573_p12 = scmp.lt.u32.totalorder %s2566_s26, %s3335_s6 }
  0x43   : > { %p2569_p8 = pnand %p2567_p3, %p2951_p2 }
  0x45   : > { %p2570_p10 = pneg %p2569_p8 }
  0x47   : > { %p2575_p1 = pnand %p2573_p12, %p2570_p10 }
  0x49   : > { %2578 = shalt.err (!%p2575_p1)
}
  0x4a   : > { %s2579_s18 = scalar_lea.vmem %s352_s30, 512  ;;  %p2587_p7 = scmp.lt.s32.totalorder %s352_s30, %s352_s30 }
  0x4b   : > { %p2580_p4 = scmp.ne.s32.totalorder %s352_s30, %s2579_s18  ;;  %p2588_p9 = scmp.lt.s32.totalorder %s2579_s18, %s2579_s18 }
  0x4d   : > { %p2582_p5 = pnand %p2580_p4, %p2951_p2  ;;  %p2589_p11 = por %p2588_p9, %p2587_p7 }
  0x4f   : > { %p2583_p6 = pneg %p2582_p5 }
  0x51   : > { %p2590_p13 = pnand %p2589_p11, %p2583_p6 }
  0x53   : > { %2593 = shalt.err (!%p2590_p13)
}
  0x54   : > { %2371 = dma.hbm_to_vmem [thread:$0]  (!%p2939_p0), %s3335_s6, 512, %s352_s30, [#allocation12], %s2788_s13, %s2788_s13, %s2789_s24  }
  0x55   : > { %s2790_s20 = smov [#allocation5]   ;;  %s2791_s28 = smov [#allocation10]  }
  0x56   : > { %s312_s29 = sshll.u32 %s2790_s20, 4  ;;  %s338_s22 = sshll.u32 %s2791_s28, 4  ;;  %s313_s29 = int_to_ptr.vmem [resolvable:$true] %s312_s29  ;;  %s339_s22 = int_to_ptr.vmem [resolvable:$true] %s338_s22 }
  0x57   : > { %s2594_s19 = scalar_lea.hbm %s3332_s3, 512 }
  0x58   : > { %p2595_p3 = scmp.ne.s32.totalorder %s3332_s3, %s2594_s19  ;;  %p2601_p12 = scmp.lt.u32.totalorder %s2594_s19, %s3332_s3 }
  0x5a   : > { %p2597_p8 = pnand %p2595_p3, %p2951_p2 }
  0x5c   : > { %p2598_p10 = pneg %p2597_p8 }
  0x5e   : > { %p2603_p1 = pnand %p2601_p12, %p2598_p10 }
  0x60   : > { %2606 = shalt.err (!%p2603_p1)
}
  0x61   : > { %s2607_s30 = scalar_lea.vmem %s313_s29, 512  ;;  %p2615_p7 = scmp.lt.s32.totalorder %s313_s29, %s313_s29 }
  0x62   : > { %p2608_p4 = scmp.ne.s32.totalorder %s313_s29, %s2607_s30  ;;  %p2616_p9 = scmp.lt.s32.totalorder %s2607_s30, %s2607_s30 }
  0x64   : > { %p2610_p5 = pnand %p2608_p4, %p2951_p2  ;;  %p2617_p11 = por %p2616_p9, %p2615_p7 }
  0x66   : > { %p2611_p6 = pneg %p2610_p5 }
  0x68   : > { %p2618_p13 = pnand %p2617_p11, %p2611_p6 }
  0x6a   : > { %2621 = shalt.err (!%p2618_p13)
}
  0x6b   : > { %2362 = dma.hbm_to_vmem [thread:$0]  (!%p2939_p0), %s3332_s3, 512, %s313_s29, [#allocation6], %s2788_s13, %s2788_s13, %s2789_s24  }
  0x6c   : > { %s2622_s28 = scalar_lea.hbm %s3334_s5, 512 }
  0x6d   : > { %p2623_p3 = scmp.ne.s32.totalorder %s3334_s5, %s2622_s28  ;;  %p2629_p12 = scmp.lt.u32.totalorder %s2622_s28, %s3334_s5 }
  0x6f   : > { %p2625_p8 = pnand %p2623_p3, %p2951_p2 }
  0x71   : > { %p2626_p10 = pneg %p2625_p8 }
  0x73   : > { %p2631_p1 = pnand %p2629_p12, %p2626_p10 }
  0x75   : > { %2634 = shalt.err (!%p2631_p1)
}
  0x76   : > { %s2635_s10 = scalar_lea.vmem %s339_s22, 512  ;;  %p2643_p7 = scmp.lt.s32.totalorder %s339_s22, %s339_s22 }
  0x77   : > { %p2636_p4 = scmp.ne.s32.totalorder %s339_s22, %s2635_s10  ;;  %p2644_p9 = scmp.lt.s32.totalorder %s2635_s10, %s2635_s10 }
  0x79   : > { %p2638_p5 = pnand %p2636_p4, %p2951_p2  ;;  %p2645_p11 = por %p2644_p9, %p2643_p7 }
  0x7b   : > { %p2639_p6 = pneg %p2638_p5 }
  0x7d   : > { %p2646_p13 = pnand %p2645_p11, %p2639_p6 }
  0x7f   : > { %2649 = shalt.err (!%p2646_p13)
}
  0x80   : > { %2368 = dma.hbm_to_vmem [thread:$0]  (!%p2939_p0), %s3334_s5, 512, %s339_s22, [#allocation9], %s2788_s13, %s2788_s13, %s2789_s24  }
  0x81   : > { %s2792_s4 = smov [#allocation13]   ;;  %s2650_s28 = scalar_lea.hbm %s3337_s8, 512 }
  0x82   : > { %s367_s9 = sshll.u32 %s2792_s4, 4  ;;  %p2651_p3 = scmp.ne.s32.totalorder %s3337_s8, %s2650_s28  ;;  %s368_s9 = int_to_ptr.vmem [resolvable:$true] %s367_s9 }
  0x83   : > { %p2657_p12 = scmp.lt.u32.totalorder %s2650_s28, %s3337_s8 }
  0x84   : > { %p2653_p8 = pnand %p2651_p3, %p2951_p2 }
  0x86   : > { %p2654_p10 = pneg %p2653_p8 }
  0x88   : > { %p2659_p1 = pnand %p2657_p12, %p2654_p10 }
  0x8a   : > { %2662 = shalt.err (!%p2659_p1)
}
  0x8b   : > { %s2663_s22 = scalar_lea.vmem %s368_s9, 512  ;;  %p2671_p7 = scmp.lt.s32.totalorder %s368_s9, %s368_s9 }
  0x8c   : > { %p2664_p4 = scmp.ne.s32.totalorder %s368_s9, %s2663_s22  ;;  %p2672_p9 = scmp.lt.s32.totalorder %s2663_s22, %s2663_s22 }
  0x8e   : > { %p2666_p5 = pnand %p2664_p4, %p2951_p2  ;;  %p2673_p11 = por %p2672_p9, %p2671_p7 }
  0x90   : > { %p2667_p6 = pneg %p2666_p5 }
  0x92   : > { %p2674_p13 = pnand %p2673_p11, %p2667_p6 }
  0x94   : > { %2677 = shalt.err (!%p2674_p13)
}
  0x95   : > { %2374 = dma.hbm_to_vmem [thread:$0]  (!%p2939_p0), %s3337_s8, 512, %s368_s9, [#allocation12], %s2788_s13, %s2788_s13, %s2789_s24  }
  0x96   : > { %p3373_p3 = scmp.ne.s32.totalorder %s3367_s11, 0 }
  0x97   : > { %p3374_p2 = scmp.ne.s32.totalorder (!%p3373_p3), %s3368_s12, 0 }
  0x98   : > { %420 = sbr.rel (%p3373_p3) target bundleno = 2453 (0x995), region = 60 }
  0x9f   : > { %2739 = dma.done.wait (%p3374_p2), [#allocation6], 512  }
  0xa0   : > { %2741 = vsyncadd (%p3374_p2), [#allocation6], 4294966784 }
  0xa1   : > { %2743 = dma.done.wait (%p3374_p2), [#allocation9], 1024  }
  0xa2   : > { %2745 = vsyncadd (%p3374_p2), [#allocation9], 4294966272 }
  0xa3   : > { %2747 = dma.done.wait (%p3374_p2), [#allocation12], 1024  }
  0xa4   : > { %2749 = vsyncadd (%p3374_p2), [#allocation12], 4294966272  ;;  %s489_s23 = sand.u32 1, %s2760_s14   ;;  %s3070_s11 = sshll.u32 %s2768_s16, 1 }
  0xa5   : > { %s2029_s25 = sshll.u32 %s489_s23, 4  ;;  %p493_p0 = scmp.lt.s32.totalorder %s2772_s17, 1 }
  0xa6   : > { %p495_p8 = scmp.lt.s32.totalorder %s3070_s11, 3  ;;  %s3091_s29 = scalar_lea.vmem [#allocation14], %s2029_s25 }
  0xa7   : > { %s494_s13 = scalar_select %p493_p0, %s2772_s17, 1 }
  0xa8   : > { %s496_s24 = scalar_select %p495_p8, %s3070_s11, 3 }
  0xa9   : > { %s2031_s30 = sshll.u32 %s494_s13, 2  ;;  %s2083_s4 = sshll.u32 %s494_s13, 4 }
  0xaa   : > { %s498_s12 = sadd.s32 %s2031_s30, %s496_s24  ;;  %s506_s20 = scalar_lea.vmem %s3330_s1, %s2083_s4 }
  0xab   : > { %s2032_s28 = sshll.u32 %s498_s12, 3  ;;  %p2038_p10 = scmp.ne.s32.totalorder %s2768_s16, 0 }
  0xac   : > { %s3084_s19 = scalar_lea.vmem %s3329_s0, %s2032_s28  ;;  %s3089_s10 = scalar_lea.vmem %s3331_s2, %s2032_s28  ;;  %v524_v0 = vld [vmem:[#allocation8] sm:$0xff] (!%p2038_p10)  ;;  %v525_v1 = vld [vmem:[#allocation8 + $0x8] sm:$0xff] (!%p2038_p10)  ;;  %vm528_vm0 = vcmask (!%p2038_p10), 261120   ;;  %v526_v5 = vld [vmem:[#allocation8 + $0x10] sm:$0xff] (!%p2038_p10) }
  0xad   : > { %521 = sbr.rel (%p2038_p10) target bundleno = 398 (0x18e), region = 84  ;;  %v612_v2 = vld [vmem:[#allocation10] sm:$0xff] (!%p2038_p10)  ;;  %v2257_v3 = vpack.c.bf16 (!%p2038_p10), %v525_v1, %v524_v0  ;;  %v613_v4 = vld [vmem:[#allocation10 + $0x8] sm:$0xff] (!%p2038_p10)  ;;  %v527_v6 = vld [vmem:[#allocation8 + $0x18] sm:$0xff] (!%p2038_p10) }
  0xae   : > { %v2265_v7 = vpack.c.bf16 (!%p2038_p10), %v613_v4, %v612_v2  ;;  %v2261_v8 = vpack.c.bf16 (!%p2038_p10), %v527_v6, %v526_v5  ;;  %v614_v9 = vld [vmem:[#allocation10 + $0x10] sm:$0xff] (!%p2038_p10)  ;;  %v615_v10 = vld [vmem:[#allocation10 + $0x18] sm:$0xff] (!%p2038_p10) }
  0xaf   : > { %v522_v11 = vld [vmem:[%s506_s20] sm:$0xff] (!%p2038_p10)  ;;  %2258 = vmatprep.subr.bf16.mxu0 (!%p2038_p10), %v2257_v3  ;;  %v2269_v12 = vpack.c.bf16 (!%p2038_p10), %v615_v10, %v614_v9  ;;  %v523_v13 = vld [vmem:[%s506_s20 + $0x8] sm:$0xff] (!%p2038_p10) }
  0xb0   : > { %2154 = vmatprep.mubr.msk.f32.mxu0 (!%p2038_p10), %vm528_vm0, %v522_v11  ;;  %2266 = vmatprep.subr.bf16.mxu1 (!%p2038_p10), %v2265_v7 }
  0xb1   : > { %2260 = vmatpush3.bf16.msra.mxu0 (!%p2038_p10), %v2257_v3  ;;  %2268 = vmatpush3.bf16.msra.mxu1 (!%p2038_p10), %v2265_v7 }
  0xb2   : > { %2262 = vmatprep.subr.bf16.mxu0 (!%p2038_p10), %v2261_v8  ;;  %2270 = vmatprep.subr.bf16.mxu1 (!%p2038_p10), %v2269_v12 }
  0xb3   : > { %2165 = vmatprep.mubr.msk.f32.mxu1 (!%p2038_p10), %vm528_vm0, %v522_v11 }
  0xb5   : > { %2264 = vmatpush3.bf16.msra.mxu0 %v2261_v8  ;;  %2272 = vmatpush3.bf16.msra.mxu1 %v2269_v12 }
  0xb8   : > { %2155 = vmatmul.mubr.msk.f32.vlgmr.msra.gmra.mrb[0].mxu0 %vm528_vm0, %v523_v13  ;;  %2166 = vmatmul.mubr.msk.f32.vlgmr.msra.gmra.mrb[0].mxu1 %vm528_vm0, %v523_v13 }
 0x18b   : > { %v2156_v14 = vpop.f32.mrb[0].mxu0  ;;  %v2167_v15 = vpop.f32.mrb[0].mxu1 }
 0x18c   : > { %611 = vst.msk [vmem:[#allocation2 + $0x8] sm:$0xff] %vm528_vm0, %v2156_v14  ;;  %v601_v16 = vpop.f32.mrb[1].mxu0  ;;  %692 = vst.msk [vmem:[#allocation3 + $0x8] sm:$0xff] %vm528_vm0, %v2167_v15  ;;  %v682_v17 = vpop.f32.mrb[1].mxu1 }
 0x18d   : > { %610 = vst.msk [vmem:[#allocation2] sm:$0xff] %vm528_vm0, %v601_v16  ;;  %691 = vst.msk [vmem:[#allocation3] sm:$0xff] %vm528_vm0, %v682_v17 }
 0x18e PF: > { %v697_v18 = vld [vmem:[#allocation5] sm:$0xff]  ;;  %v698_v19 = vld [vmem:[#allocation5 + $0x8] sm:$0xff]  ;;  %v699_v20 = vld [vmem:[#allocation5 + $0x10] sm:$0xff]  ;;  %vm701_vm1 = vcmask 261120   ;;  %vm789_vm2 = vcmask 64512   ;;  %s2793_s16 = smov 120  }
 0x18f   : > { %v2273_v21 = vpack.c.bf16 %v698_v19, %v697_v18  ;;  %v700_v22 = vld [vmem:[#allocation5 + $0x18] sm:$0xff]  ;;  %v3103_v23 = vld [vmem:[%s3084_s19] sm:$0xff]  ;;  %vm3111_vm3 = vmpackc.low %vm789_vm2, %vm789_vm2  ;;  %vm877_vm4 = vcmask 130048   ;;  %s2794_s25 = smov 112   ;;  %s2795_s13 = smov 104   ;;  %vm1199_vm5 = vcmask 130112  }
 0x190   : > { %v2277_v24 = vpack.c.bf16 %v700_v22, %v699_v20  ;;  %2176 = vmatprep.mubr.msk.f32.mxu0 %vm701_vm1, %v3103_v23  ;;  %v3122_v30 = vld [vmem:[%s3084_s19 + $0x8] sm:$0xff]  ;;  %v3148_v42 = vld [vmem:[%s3089_s10] sm:$0xff]  ;;  %s2796_s24 = smov 16   ;;  %s2797_s30 = smov 8   ;;  %vm1418_vm6 = vcmask 195712   ;;  %vm1637_vm7 = vcmask 261312  }
 0x191   : > { %2274 = vmatprep.subr.bf16.mxu0 %v2273_v21  ;;  %v3145_v41 = vld [vmem:[%s3089_s10 + $0x8] sm:$0xff]  ;;  %s2798_s4 = smov 24   ;;  %s2079_s15 = sshll.u32 %s2772_s17, 2 }
 0x192   : > { %2276 = vmatpush3.bf16.msra.mxu0 %v2273_v21  ;;  %s1849_s20 = sadd.s32 %s2079_s15, %s3070_s11  ;;  %s3377_s26 = sld [smem:[#allocation29_spill]] }
 0x193   : > { %v984_v26 = vld [vmem:[#allocation2 + $0x8] sm:$0xff]  ;;  %2278 = vmatprep.subr.bf16.mxu0 %v2277_v24  ;;  %v986_v50 = vld [vmem:[#allocation3 + $0x8] sm:$0xff]  ;;  %s2080_s19 = sshll.u32 %s1849_s20, 7  ;;  %s1852_s18 = sshll.u32 %s3091_s29, 4  ;;  %s3268_s18 = int_to_ptr.vmem [resolvable:$true] %s1852_s18 }
 0x194   : > { %v983_v25 = vld [vmem:[#allocation2] sm:$0xff]  ;;  %v985_v49 = vld [vmem:[#allocation3] sm:$0xff]  ;;  %s3276_s17 = scalar_lea.sflag [#allocation7], %s489_s23  ;;  %s2678_s11 = scalar_lea.vmem %s3268_s18, 256 }
 0x195   : > { %v3107_v27 = vpack.i.bf16 %v984_v26, %v983_v25  ;;  %v2281_v28 = vpack.c.bf16 %v984_v26, %v983_v25  ;;  %v3154_v51 = vpack.i.bf16 %v986_v50, %v985_v49  ;;  %v2287_v52 = vpack.c.bf16 %v986_v50, %v985_v49  ;;  %p2679_p12 = scmp.ne.s32.totalorder %s3268_s18, %s2678_s11  ;;  %p3380_p1 = scmp.ne.s32.totalorder %s3363_s27, 0 }
 0x196   : > { %2280 = vmatpush3.bf16.msra.mxu0 %v2277_v24 }
 0x197   : > { %2469 = vrot.lane.b32.xlu0 %v3107_v27, %s2793_s16  ;;  %2283 = vmatprep.subr.msk.bf16.mxu1 %vm3111_vm3, %v2281_v28  ;;  %p2680_p4 = pnand %p2679_p12, %p3380_p1 }
 0x198   : > { %2286 = vmatpush3.bf16.xpose.msk.msra.mxu1 %vm3111_vm3, %v2281_v28  ;;  %2288 = vmatprep.subr.bf16.mxu0 %v2287_v52 }
 0x199   : > { %2177 = vmatmul.mubr.msk.f32.vlgmr.msra.gmra.mrb[0].mxu0 %vm701_vm1, %v3122_v30  ;;  %p2681_p5 = pneg %p2680_p4 }
 0x19a   : > { %2290 = vmatpush3.bf16.msra.mxu0 %v2287_v52 }
 0x209   : > { %v2470_v31 = vpop.permute.xlu0 %2469 }
 0x20a   : > { %v2472_v32 = vunpack.i.h.bf16 %v2470_v31  ;;  %v2471_v33 = vunpack.i.l.bf16 %v2470_v31 }
 0x20c   : > { %v2291_v34 = vpack.c.bf16 %v2472_v32, %v2471_v33 }
 0x20e   : > { %2293 = vmatprep.subr.msk.bf16.mxu1 %vm3111_vm3, %v2291_v34 }
 0x26c   : > { %v2178_v35 = vpop.f32.mrb[0].mxu0 }
 0x26d   : > { %v3128_v36 = vmul.f32 0.35355338, %v2178_v35  ;;  %v774_v37 = vpop.f32.mrb[1].mxu0 }
 0x26e   : > { %v3130_v38 = vmul.f32 0.35355338, %v774_v37 }
 0x26f   : > { %989 = vrot.lane.b32.xlu1 %v3128_v36, %s2793_s16 }
 0x270   : > { %987 = vrot.lane.b32.xlu0 %v3130_v38, %s2793_s16  ;;  %2183 = vmatprep.mubr.msk.f32.mxu1 %vm789_vm2, %v3130_v38 }
 0x271   : > { %2184 = vmatmul.mubr.msk.f32.vlgmr.msra.gmra.mrb[0].mxu1 %vm789_vm2, %v3128_v36 }
 0x272   : > { %2296 = vmatpush3.bf16.xpose.msk.msra.mxu1 %vm3111_vm3, %v2291_v34 }
 0x2e1   : > { %v990_v40 = vpop.permute.xlu1 %989 }
 0x2e2   : > { %v988_v39 = vpop.permute.xlu0 %987 }
 0x2e3   : > { %2197 = vmatprep.mubr.msk.f32.mxu1 %vm789_vm2, %v988_v39 }
 0x2e4   : > { %2198 = vmatmul.mubr.msk.f32.vlgmr.msra.gmra.mrb[2].mxu1 %vm789_vm2, %v990_v40 }
 0x344   : > { %v2185_v43 = vpop.f32.mrb[0].mxu1 }
 0x345   : > { %v874_v44 = vadd.f32 %v2185_v43, %v3145_v41  ;;  %v868_v45 = vpop.f32.mrb[1].mxu1 }
 0x346   : > { %v869_v46 = vadd.f32 %v868_v45, %v3148_v42 }
 0x347   : > { %v881_v47 = vsel %vm877_vm4, %v874_v44, -inf }
 0x348   : > { %882 = vmax.xlane.f32.xlu0 %v881_v47  ;;  %v878_v48 = vsel %vm877_vm4, %v869_v46, -inf }
 0x349   : > { %879 = vmax.xlane.f32.xlu1 %v878_v48 }
 0x3b7   : > { %v2199_v53 = vpop.f32.mrb[2].mxu1 }
 0x3b8   : > { %v1077_v54 = vadd.f32 %v2199_v53, %v3145_v41  ;;  %v1071_v55 = vpop.f32.mrb[3].mxu1 }
 0x3b9   : > { %v1072_v56 = vadd.f32 %v1071_v55, %v3148_v42 }
 0x3ba   : > { %v1083_v57 = vsel %vm877_vm4, %v1077_v54, -inf }
 0x3bb   : > { %1084 = vmax.xlane.f32.xlu1 %v1083_v57  ;;  %v1080_v58 = vsel %vm877_vm4, %v1072_v56, -inf }
 0x3bc   : > { %1081 = vmax.xlane.f32.xlu0 %v1080_v58 }
 0x3cc   : > { %2479 = vrot.lane.b32.xlu1 %v3107_v27, %s2794_s25 }
 0x3d0   : > { %1206 = vrot.lane.b32.xlu1 %v3130_v38, %s2794_s25 }
 0x3d2   : > { %2474 = vrot.lane.b32.xlu0 %v3154_v51, %s2793_s16  ;;  %s3378_s16 = sld [smem:[#allocation30_spill]] }
 0x3d4   : > { %2489 = vrot.lane.b32.xlu1 %v3107_v27, %s2795_s13 }
 0x3d5   : > { %v883_v59 = vpop.xlane.xlu0 %882 }
 0x3d6   : > { %v885_v60 = vsub.f32 %v874_v44, %v883_v59  ;;  %1208 = vrot.lane.b32.xlu0 %v3128_v36, %s2794_s25  ;;  %v880_v61 = vpop.xlane.xlu1 %879 }
 0x3d7   : > { %v884_v62 = vsub.f32 %v869_v46, %v880_v61 }
 0x3d8   : > { %v888_v63 = vmul.f32 1.442695, %v885_v60 }
 0x3d9   : > { %v886_v0 = vmul.f32 1.442695, %v884_v62 }
 0x3db   : > { %2498 = vpow2.f32 %v886_v0 }
 0x3dc   : > { %2500 = vpow2.f32 %v888_v63 }
 0x3e5   : > { %v3168_v1 = vpop.eup %2498 }
 0x3e6   : > { %v3170_v2 = vpop.eup %2500  ;;  %2190 = vmatprep.mubr.msk.f32.mxu0 %vm877_vm4, %v3168_v1 }
 0x3e7   : > { %2191 = vmatmul.mubr.msk.f32.vlgmr.msra.gmra.mrb[2].mxu0 %vm877_vm4, %v3170_v2 }
 0x448   : > { %v1085_v3 = vpop.xlane.xlu1 %1084 }
 0x449   : > { %v1087_v4 = vsub.f32 %v1077_v54, %v1085_v3  ;;  %v1082_v5 = vpop.xlane.xlu0 %1081 }
 0x44a   : > { %v1086_v6 = vsub.f32 %v1072_v56, %v1082_v5 }
 0x44b   : > { %v1090_v7 = vmul.f32 1.442695, %v1087_v4 }
 0x44c   : > { %v1088_v8 = vmul.f32 1.442695, %v1086_v6  ;;  %v2480_v9 = vpop.permute.xlu1 %2479 }
 0x44d   : > { %v2482_v10 = vunpack.i.h.bf16 %v2480_v9  ;;  %v2481_v11 = vunpack.i.l.bf16 %v2480_v9  ;;  %v2475_v12 = vpop.permute.xlu0 %2474 }
 0x44e   : > { %2502 = vpow2.f32 %v1088_v8  ;;  %v2477_v13 = vunpack.i.h.bf16 %v2475_v12  ;;  %v2476_v14 = vunpack.i.l.bf16 %v2475_v12 }
 0x44f   : > { %2504 = vpow2.f32 %v1090_v7  ;;  %v2301_v15 = vpack.c.bf16 %v2482_v10, %v2481_v11  ;;  %v1642_v10 = vld [vmem:[#allocation11] sm:$0xff]  ;;  %v1643_v11 = vld [vmem:[#allocation11 + $0x8] sm:$0xff] }
 0x450   : > { %v2297_v16 = vpack.c.bf16 %v2477_v13, %v2476_v14  ;;  %v1207_v19 = vpop.permute.xlu1 %1206 }
 0x451   : > { %v1209_v20 = vpop.permute.xlu0 %1208 }
 0x452   : > { %2298 = vmatprep.subr.bf16.mxu0 %v2297_v16 }
 0x453   : > { %2300 = vmatpush3.bf16.msra.mxu0 %v2297_v16 }
 0x454   : > { %2303 = vmatprep.subr.msk.bf16.mxu0 %vm3111_vm3, %v2301_v15  ;;  %v2490_v34 = vpop.permute.xlu1 %2489 }
 0x455   : > { %v2492_v46 = vunpack.i.h.bf16 %v2490_v34  ;;  %v2491_v47 = vunpack.i.l.bf16 %v2490_v34 }
 0x457   : > { %v2311_v50 = vpack.c.bf16 %v2492_v46, %v2491_v47 }
 0x458   : > { %v2503_v17 = vpop.eup %2502 }
 0x459   : > { %v3180_v18 = vpop.eup %2504  ;;  %2204 = vmatprep.mubr.msk.f32.mxu0 %vm877_vm4, %v2503_v17  ;;  %v1092_v62 = vsel %vm877_vm4, %v2503_v17, 0.0  ;;  %v1644_v17 = vld [vmem:[#allocation11 + $0x10] sm:$0xff] }
 0x45a   : > { %2205 = vmatmul.mubr.msk.f32.vlgmr.msra.gmra.mrb[4].mxu0 %vm877_vm4, %v3180_v18  ;;  %v1095_v63 = vsel %vm877_vm4, %v3180_v18, 0.0  ;;  %v1645_v18 = vld [vmem:[#allocation11 + $0x18] sm:$0xff] }
 0x45b   : > { %2211 = vmatprep.mubr.msk.f32.mxu0 %vm789_vm2, %v1207_v19 }
 0x45c   : > { %2306 = vmatpush3.bf16.xpose.msk.msra.mxu0 %vm3111_vm3, %v2301_v15 }
 0x463   : > { %2212 = vmatmul.mubr.msk.f32.vlgmr.msra.gmra.mrb[6].mxu0 %vm789_vm2, %v1209_v20  ;;  %v2325_v20 = vpack.c.bf16 %v1645_v18, %v1644_v17 }
 0x4ba   : > { %v3189_v21 = vpop.f32.mrb[2].mxu0 }
 0x4bb   : > { %v3191_v22 = vpop.f32.mrb[3].mxu0 }
 0x52d   : > { %v3193_v24 = vpop.f32.mrb[4].mxu0 }
 0x52e   : > { %v3195_v25 = vpop.f32.mrb[5].mxu0 }
 0x536   : > { %v2213_v26 = vpop.f32.mrb[6].mxu0 }
 0x537   : > { %v1296_v27 = vadd.f32 %v2213_v26, %v3145_v41  ;;  %v1290_v28 = vpop.f32.mrb[7].mxu0 }
 0x538   : > { %v1291_v31 = vadd.f32 %v1290_v28, %v3148_v42 }
 0x539   : > { %v1302_v32 = vsel %vm877_vm4, %v1296_v27, -inf }
 0x53a   : > { %1303 = vmax.xlane.f32.xlu0 %v1302_v32  ;;  %v1299_v33 = vsel %vm877_vm4, %v1291_v31, -inf  ;;  %v893_v32 = vsel %vm877_vm4, %v3170_v2, 0.0 }
 0x53b   : > { %1300 = vmax.xlane.f32.xlu1 %v1299_v33 }
 0x54c   : > { %1425 = vrot.lane.b32.xlu1 %v3130_v38, %s2795_s13 }
 0x550   : > { %2484 = vrot.lane.b32.xlu0 %v3154_v51, %s2794_s25  ;;  %s3379_s25 = smov %s3378_s16 }
 0x554   : > { %1427 = vrot.lane.b32.xlu0 %v3128_v36, %s2795_s13 }
 0x5c7   : > { %v1304_v35 = vpop.xlane.xlu0 %1303 }
 0x5c8   : > { %v1306_v37 = vsub.f32 %v1296_v27, %v1304_v35  ;;  %v1301_v39 = vpop.xlane.xlu1 %1300 }
 0x5c9   : > { %v1305_v40 = vsub.f32 %v1291_v31, %v1301_v39 }
 0x5ca   : > { %v1309_v43 = vmul.f32 1.442695, %v1306_v37 }
 0x5cb   : > { %v1307_v44 = vmul.f32 1.442695, %v1305_v40  ;;  %v2485_v45 = vpop.permute.xlu0 %2484 }
 0x5cc   : > { %v2487_v48 = vunpack.i.h.bf16 %v2485_v45  ;;  %v2486_v49 = vunpack.i.l.bf16 %v2485_v45  ;;  %v1426_v53 = vpop.permute.xlu1 %1425 }
 0x5cd   : > { %2506 = vpow2.f32 %v1307_v44 }
 0x5ce   : > { %2508 = vpow2.f32 %v1309_v43  ;;  %v2307_v38 = vpack.c.bf16 %v2487_v48, %v2486_v49 }
 0x5cf   : > { %v1428_v54 = vpop.permute.xlu0 %1427 }
 0x5d0   : > { %2308 = vmatprep.subr.bf16.mxu1 %v2307_v38 }
 0x5d1   : > { %2310 = vmatpush3.bf16.msra.mxu1 %v2307_v38 }
 0x5d2   : > { %2313 = vmatprep.subr.msk.bf16.mxu1 %vm3111_vm3, %v2311_v50 }
 0x5d7   : > { %v2507_v36 = vpop.eup %2506 }
 0x5d8   : > { %v2509_v52 = vpop.eup %2508  ;;  %2218 = vmatprep.mubr.msk.f32.mxu1 %vm877_vm4, %v2507_v36  ;;  %v1311_v0 = vsel %vm877_vm4, %v2507_v36, 0.0  ;;  %v1743_v36 = vld [vmem:[#allocation13 + $0x8] sm:$0xff] }
 0x5d9   : > { %2219 = vmatmul.mubr.msk.f32.vlgmr.msra.gmra.mrb[4].mxu1 %vm877_vm4, %v2509_v52 }
 0x5da   : > { %2316 = vmatpush3.bf16.xpose.msk.msra.mxu1 %vm3111_vm3, %v2311_v50  ;;  %2225 = vmatprep.mubr.msk.f32.mxu1 %vm789_vm2, %v1426_v53 }
 0x5e1   : > { %2226 = vmatmul.mubr.msk.f32.vlgmr.msra.gmra.mrb[6].mxu1 %vm789_vm2, %v1428_v54  ;;  %v1745_v54 = vld [vmem:[#allocation13 + $0x18] sm:$0xff] }
 0x6ac   : > { %v3215_v55 = vpop.f32.mrb[4].mxu1 }
 0x6ad   : > { %v3217_v56 = vpop.f32.mrb[5].mxu1 }
 0x6b4   : > { %v2227_v57 = vpop.f32.mrb[6].mxu1 }
 0x6b5   : > { %v1515_v58 = vadd.f32 %v2227_v57, %v3145_v41  ;;  %v1509_v59 = vpop.f32.mrb[7].mxu1  ;;  %v1314_v41 = vsel %vm877_vm4, %v2509_v52, 0.0  ;;  %v1744_v52 = vld [vmem:[#allocation13 + $0x10] sm:$0xff] }
 0x6b6   : > { %v1510_v60 = vadd.f32 %v1509_v59, %v3148_v42  ;;  %v890_v42 = vsel %vm877_vm4, %v3168_v1, 0.0 }
 0x6b7   : > { %v1521_v61 = vsel %vm877_vm4, %v1515_v58, -inf }
 0x6b8   : > { %1522 = vmax.xlane.f32.xlu0 %v1521_v61  ;;  %v1518_v29 = vsel %vm877_vm4, %v1510_v60, -inf }
 0x6b9   : > { %1519 = vmax.xlane.f32.xlu1 %v1518_v29 }
 0x6bd   : > { %1093 = vadd.xlane.f32.xlu1 %v1092_v62  ;;  %v2069_v62 = vld [vmem:[%s3336_s7] ss:$0 sm:$0xff] }
 0x6c1   : > { %1096 = vadd.xlane.f32.xlu1 %v1095_v63 }
 0x6c5   : > { %1312 = vadd.xlane.f32.xlu1 %v1311_v0 }
 0x6c9   : > { %1315 = vadd.xlane.f32.xlu1 %v1314_v41 }
 0x6ce   : > { %2494 = vrot.lane.b32.xlu0 %v3154_v51, %s2795_s13  ;;  %v2321_v51 = vpack.c.bf16 %v1643_v11, %v1642_v10  ;;  %s3266_s13 = scalar_lea.hbm %s3378_s16, %s2080_s19 }
 0x6ed   : > { %891 = vadd.xlane.f32.xlu0 %v890_v42 }
 0x745   : > { %v1523_v3 = vpop.xlane.xlu0 %1522 }
 0x746   : > { %v1525_v4 = vsub.f32 %v1515_v58, %v1523_v3  ;;  %v1520_v5 = vpop.xlane.xlu1 %1519 }
 0x747   : > { %v1524_v6 = vsub.f32 %v1510_v60, %v1520_v5 }
 0x748   : > { %v1528_v7 = vmul.f32 1.442695, %v1525_v4 }
 0x749   : > { %v1526_v8 = vmul.f32 1.442695, %v1524_v6  ;;  %v2495_v9 = vpop.permute.xlu0 %2494 }
 0x74a   : > { %v1094_v12 = vpop.xlane.xlu1 %1093  ;;  %v2497_v13 = vunpack.i.h.bf16 %v2495_v9  ;;  %v2496_v14 = vunpack.i.l.bf16 %v2495_v9 }
 0x74b   : > { %2510 = vpow2.f32 %v1526_v8 }
 0x74c   : > { %2512 = vpow2.f32 %v1528_v7  ;;  %v2317_v15 = vpack.c.bf16 %v2497_v13, %v2496_v14 }
 0x74e   : > { %v1097_v16 = vpop.xlane.xlu1 %1096  ;;  %2318 = vmatprep.subr.bf16.mxu0 %v2317_v15 }
 0x74f   : > { %2320 = vmatpush3.bf16.msra.mxu0 %v2317_v15  ;;  %v2074_v15 = vld [vmem:[%s3377_s26] ss:$0 sm:$0xff] }
 0x750   : > { %2322 = vmatprep.subr.bf16.mxu0 %v2321_v51 }
 0x752   : > { %v1313_v1 = vpop.xlane.xlu1 %1312 }
 0x755   : > { %v2511_v19 = vpop.eup %2510 }
 0x756   : > { %v2513_v26 = vpop.eup %2512  ;;  %2232 = vmatprep.mubr.msk.f32.mxu0 %vm877_vm4, %v2511_v19  ;;  %v1316_v27 = vpop.xlane.xlu1 %1315  ;;  %v1530_v28 = vsel %vm877_vm4, %v2511_v19, 0.0 }
 0x757   : > { %2514 = vrcp.f32 %v1316_v27  ;;  %2233 = vmatmul.mubr.msk.f32.vlgmr.msra.gmra.mrb[8].mxu0 %vm877_vm4, %v2513_v26  ;;  %1531 = vadd.xlane.f32.xlu1 %v1530_v28  ;;  %v1533_v31 = vsel %vm877_vm4, %v2513_v26, 0.0 }
 0x758   : > { %2324 = vmatpush3.bf16.msra.mxu0 %v2321_v51  ;;  %2243 = vmatprep.mubr.msk.f32.mxu0 %vm701_vm1, %v3103_v23  ;;  %2516 = vrcp.f32 %v1094_v12 }
 0x759   : > { %2326 = vmatprep.subr.bf16.mxu0 %v2325_v20  ;;  %2518 = vrcp.f32 %v1097_v16 }
 0x75a   : > { %2520 = vrcp.f32 %v1313_v1 }
 0x75b   : > { %1534 = vadd.xlane.f32.xlu1 %v1533_v31 }
 0x75c   : > { %2328 = vmatpush3.bf16.msra.mxu0 %v2325_v20 }
 0x75f   : > { %894 = vadd.xlane.f32.xlu1 %v893_v32  ;;  %2244 = vmatmul.mubr.msk.f32.vlgmr.msra.gmra.mrb[10].mxu0 %vm701_vm1, %v3122_v30 }
 0x761   : > { %v2515_v33 = vpop.eup %2514 }
 0x762   : > { %v1409_v34 = vmul.f32 %v2515_v33, %v3215_v55  ;;  %v2517_v23 = vpop.eup %2516  ;;  %v2333_v55 = vpack.c.bf16 %v1745_v54, %v1744_v52 }
 0x763   : > { %v1189_v35 = vmul.f32 %v2517_v23, %v3195_v25  ;;  %v2519_v37 = vpop.eup %2518 }
 0x764   : > { %1414 = vrot.lane.b32.xlu0 %v1409_v34, %s2796_s24  ;;  %v1190_v2 = vmul.f32 %v2519_v37, %v3193_v24  ;;  %v2521_v39 = vpop.eup %2520 }
 0x765   : > { %v1408_v30 = vmul.f32 %v2521_v39, %v3217_v56 }
 0x770   : > { %1193 = vrot.lane.b32.xlu1 %v1189_v35, %s2797_s30 }
 0x774   : > { %1195 = vrot.lane.b32.xlu1 %v1190_v2, %s2797_s30 }
 0x778   : > { %1412 = vrot.lane.b32.xlu1 %v1408_v30, %s2796_s24  ;;  %s2799_s24 = smov [#allocation14]  }
 0x77a   : > { %v892_v40 = vpop.xlane.xlu0 %891 }
 0x77b   : > { %2522 = vrcp.f32 %v892_v40 }
 0x785   : > { %v2523_v43 = vpop.eup %2522 }
 0x786   : > { %v979_v44 = vmul.f32 %v2523_v43, %v3191_v22  ;;  %v1742_v22 = vld [vmem:[#allocation13] sm:$0xff] }
 0x787   : > { %v2329_v53 = vpack.c.bf16 %v1743_v36, %v1742_v22 }
 0x788   : > { %981 = vst.msk [vmem:[#allocation4] sm:$0xff] %vm789_vm2, %v979_v44 }
 0x789   : > { %2330 = vmatprep.subr.bf16.mxu1 %v2329_v53 }
 0x78a   : > { %2332 = vmatpush3.bf16.msra.mxu1 %v2329_v53 }
 0x78b   : > { %2334 = vmatprep.subr.bf16.mxu1 %v2333_v55 }
 0x78e   : > { %2336 = vmatpush3.bf16.msra.mxu1 %v2333_v55 }
 0x7d6   : > { %v1415_v50 = vpop.permute.xlu0 %1414 }
 0x7e4   : > { %v1532_v25 = vpop.xlane.xlu1 %1531 }
 0x7e8   : > { %v1535_v45 = vpop.xlane.xlu1 %1534 }
 0x7ec   : > { %v895_v46 = vpop.xlane.xlu1 %894 }
 0x7ed   : > { %2524 = vrcp.f32 %v895_v46 }
 0x7ee   : > { %2526 = vrcp.f32 %v1532_v25 }
 0x7ef   : > { %2528 = vrcp.f32 %v1535_v45 }
 0x7f0   : > { %v1194_v47 = vpop.permute.xlu1 %1193 }
 0x7f1   : > { %1200 = vst.msk [vmem:[#allocation4] sm:$0xff] %vm1199_vm5, %v1194_v47 }
 0x7f4   : > { %v1196_v24 = vpop.permute.xlu1 %1195 }
 0x7f7   : > { %v2525_v48 = vpop.eup %2524 }
 0x7f8   : > { %v980_v49 = vmul.f32 %v2525_v48, %v3189_v21  ;;  %v1413_v38 = vpop.permute.xlu1 %1412  ;;  %v2527_v21 = vpop.eup %2526 }
 0x7f9   : > { %1419 = vst.msk [vmem:[#allocation4] sm:$0xff] %vm1418_vm6, %v1413_v38  ;;  %v2529_v59 = vpop.eup %2528 }
 0x7fa   : > { %982 = vst.msk [vmem:[#allocation4 + $0x8] sm:$0xff] %vm789_vm2, %v980_v49 }
 0x7fb   : > { %1201 = vst.msk [vmem:[#allocation4 + $0x8] sm:$0xff] %vm1199_vm5, %v1196_v24 }
 0x7fc   : > { %1420 = vst.msk [vmem:[#allocation4 + $0x8] sm:$0xff] %vm1418_vm6, %v1415_v50 }
 0x82a   : > { %v2234_v56 = vpop.f32.mrb[8].mxu0 }
 0x82b   : > { %v1616_v57 = vpop.f32.mrb[9].mxu0  ;;  %v1628_v60 = vmul.f32 %v2529_v59, %v2234_v56 }
 0x82c   : > { %v1627_v58 = vmul.f32 %v2527_v21, %v1616_v57 }
 0x82e   : > { %1631 = vrot.lane.b32.xlu1 %v1627_v58, %s2798_s4 }
 0x832   : > { %1633 = vrot.lane.b32.xlu1 %v1628_v60, %s2798_s4  ;;  %v2245_v61 = vpop.f32.mrb[10].mxu0  ;;  %s2682_s4 = sshll.u32 %s2799_s24, 4  ;;  %s2683_s4 = int_to_ptr.vmem [resolvable:$false] %s2682_s4 }
 0x833   : > { %v1719_v29 = vpop.f32.mrb[11].mxu0  ;;  %v1725_v41 = vadd.f32 %v2245_v61, %v2069_v62  ;;  %s2684_s12 = scalar_lea.vmem %s2683_s4, 512  ;;  %p2685_p6 = scmp.lt.s32.totalorder %s3268_s18, %s2683_s4 }
 0x834   : > { %v1720_v63 = vadd.f32 %v2069_v62, %v1719_v29  ;;  %p2686_p7 = scmp.lt.s32.totalorder %s2684_s12, %s2678_s11 }
 0x835   : > { %v2073_v42 = vmul.f32 -1.442695, %v1725_v41 }
 0x836   : > { %v2072_v0 = vmul.f32 -1.442695, %v1720_v63  ;;  %p2687_p9 = por %p2686_p7, %p2685_p6 }
 0x838   : > { %2530 = vpow2.f32 %v2072_v0  ;;  %p2688_p11 = pnand %p2687_p9, %p2681_p5 }
 0x839   : > { %2532 = vpow2.f32 %v2073_v42 }
 0x842   : > { %v2531_v3 = vpop.eup %2530 }
 0x843   : > { %v1734_v4 = vadd.f32 1.0, %v2531_v3  ;;  %v2533_v5 = vpop.eup %2532 }
 0x844   : > { %v1735_v6 = vadd.f32 1.0, %v2533_v5 }
 0x845   : > { %2534 = vrcp.f32 %v1734_v4 }
 0x846   : > { %2536 = vrcp.f32 %v1735_v6 }
 0x84f   : > { %v2535_v9 = vpop.eup %2534 }
 0x850   : > { %v2537_v12 = vpop.eup %2536 }
 0x8a0   : > { %v1632_v7 = vpop.permute.xlu1 %1631 }
 0x8a1   : > { %1638 = vst.msk [vmem:[#allocation4] sm:$0xff] %vm1637_vm7, %v1632_v7 }
 0x8a4   : > { %v1634_v8 = vpop.permute.xlu1 %1633 }
 0x8a5   : > { %1639 = vst.msk [vmem:[#allocation4 + $0x8] sm:$0xff] %vm1637_vm7, %v1634_v8 }
 0x8a8   : > { %v1640_v10 = vld [vmem:[#allocation4] sm:$0xff] }
 0x8a9   : > { %v1740_v11 = vmul.f32 %v2535_v9, %v1640_v10 }
 0x8ab   : > { %2254 = vmatprep.mubr.msk.f32.mxu1 %vm701_vm1, %v1740_v11 }
 0x8ac   : > { %v1641_v13 = vld [vmem:[#allocation4 + $0x8] sm:$0xff] }
 0x8ad   : > { %v1741_v14 = vmul.f32 %v2537_v12, %v1641_v13 }
 0x8af   : > { %2255 = vmatmul.mubr.msk.f32.vlgmr.msra.gmra.mrb[8].mxu1 %vm701_vm1, %v1741_v14 }
 0x982   : > { %v2256_v51 = vpop.f32.mrb[8].mxu1 }
 0x983   : > { %v1831_v16 = vadd.f32 %v2256_v51, %v2074_v15  ;;  %v1825_v1 = vpop.f32.mrb[9].mxu1 }
 0x984   : > { %v1826_v17 = vadd.f32 %v2074_v15, %v1825_v1 }
 0x985   : > { %1835 = vst.msk [vmem:[%s3091_s29 + $0x8] sm:$0xff] %vm701_vm1, %v1831_v16 }
 0x986   : > { %1834 = vst.msk [vmem:[%s3091_s29] sm:$0xff] %vm701_vm1, %v1826_v17 }
 0x987   : > { %2691 = shalt.err (!%p2688_p11)
}
 0x988   : > { %s2692_s23 = scalar_lea.hbm %s3266_s13, 256  ;;  %s2696_s15 = scalar_lea.hbm %s3379_s25, 1024 }
 0x989   : > { %p2693_p13 = scmp.ne.s32.totalorder %s3266_s13, %s2692_s23  ;;  %p2697_p0 = scmp.lt.u32.totalorder %s3266_s13, %s3379_s25 }
 0x98a   : > { %p2698_p8 = scmp.lt.u32.totalorder %s2696_s15, %s2692_s23  ;;  %p2700_p12 = scmp.lt.u32.totalorder %s2692_s23, %s3266_s13 }
 0x98b   : > { %p2694_p3 = pnand %p2693_p13, %p3380_p1 }
 0x98c   : > { %p2699_p10 = por %p2698_p8, %p2697_p0 }
 0x98d   : > { %p2695_p2 = pneg %p2694_p3 }
 0x98e   : > { %p2701_p4 = por %p2700_p12, %p2699_p10 }
 0x990   : > { %p2702_p5 = pnand %p2701_p4, %p2695_p2 }
 0x992   : > { %2705 = shalt.err (!%p2702_p5)
}
 0x993   : > { %s2800_s21 = smov 128  }
 0x994   : > { %2357 = dma.vmem_to_hbm [thread:$0]  (%p3380_p1), %s3268_s18, 256, %s3266_s13, %s3276_s17, %s2800_s21, %s2800_s21, %s2797_s30  }
 0x995 PF: > { %s3381_s26 = sld [smem:[#allocation23_spill]]  ;;  %s3382_s19 = sld [smem:[#allocation19_spill]] }
 0x996   : > { %s3383_s22 = sld [smem:[#allocation26_spill]] }
 0x99b   : > { %p2389_p6 = scmp.ge.s32.totalorder %s3381_s26, 2  ;;  %s1867_s10 = sand.u32 1, %s3382_s19  }
 0x99c   : > { %p3384_p7 = scmp.ne.s32.totalorder %s3383_s22, 0  ;;  %s1868_s16 = scalar_lea.sflag [#allocation7], %s1867_s10 }
 0x99e   : > { %p2376_p9 = pnand %p2389_p6, %p3384_p7 }
 0x9a0   : > { %2751 = dma.done.wait (!%p2376_p9), %s1868_s16, 256  }
 0x9a1   : > { %2753 = vsyncadd (!%p2376_p9), %s1868_s16, 4294967040  ;;  %s26_s20 = sadd.s32 1, %s3381_s26   ;;  %s3385_s27 = sld [smem:[#allocation20_spill]] }
 0x9a2   : > { %p23_p11 = scmp.ge.s32.totalorder %s26_s20, 6   ;;  %s3386_s15 = sld [smem:[#allocation27_spill]] }
 0x9a3   : > { %s3387_s16 = sld [smem:[#allocation21_spill]]  ;;  %s3388_s17 = sld [smem:[#allocation22_spill]] }
 0x9a4   : > { %s3389_s18 = sld [smem:[#allocation24_spill]]  ;;  %s3390_s19 = sld [smem:[#allocation25_spill]] }
 0x9a5   : > { %s3391_s13 = smov %s2760_s14  ;;  %25 = sbr.rel (!%p23_p11) target bundleno = 12 (0xc), region = 126 }
 0x9a7   : > { %s3392_s14 = smov %s3385_s27 }
 0x9ac   :  { %1873 = vsyncpa [#allocation6], 1 }
 0x9ad   :  { %1875 = vsyncpa [#allocation6 + $0x1], 1 }
 0x9ae   :  { %1876 = vsyncpa [#allocation9], 1 }
 0x9af   :  { %1877 = vsyncpa [#allocation12], 1 }
 0x9b0   :  { %1878 = vsyncpa [#allocation7], 1 }
 0x9b1   :  { %1880 = vsyncpa [#allocation7 + $0x1], 1 }

</bundles_post_ra>
